<compile_context>
chip_gen: v6e
topology: v6e:2x2x1
jax: 0.10.0
libtpu: 0.0.40
codegen_flags: <defaults>
</compile_context>

<pallas_src>
import functools

import jax
import jax.numpy as jnp
from jax.experimental import pallas as pl
from jax.experimental.pallas import tpu as pltpu


def _quantile_loss_kernel(
    pred_ref, y_ref, out_ref,
    *, quantile, valid_rows, tile_rows, inner_steps, needs_mask,
):
    c = pl.program_id(0)  # chunk axis (dual-TC on v7x; size 1 elsewhere)
    i = pl.program_id(1)  # sequential reduction axis

    @pl.when(i == 0)
    def _():
        out_ref[...] = jnp.zeros_like(out_ref)

    bias = pred_ref[...].astype(jnp.float32) - y_ref[...].astype(jnp.float32)
    loss = jnp.maximum(bias * (quantile - 1.0), bias * quantile)

    if needs_mask:  # static Python flag: only traced when tiling is ragged
        b = c * inner_steps + i  # logical row-block index
        row_ids = jax.lax.broadcasted_iota(jnp.int32, loss.shape, 0) + b * tile_rows
        # Select (NOT multiply): OOB rows may contain garbage incl. NaN/Inf.
        loss = jnp.where(row_ids < valid_rows, loss, 0.0)

    # Reduce the whole tile into the resident (1, cols) output block.  The
    # cross-vreg adds are VPU work and the final sublane fold is XLU — both
    # have large slack in this HBM-bound kernel.
    out_ref[...] += jnp.sum(loss, axis=0, keepdims=True)


def quantile_loss(pred_y: jax.Array, y: jax.Array, quantile: float) -> jax.Array:
    """Pallas TPU implementation of QuantileLoss.forward (mean over all elems)."""
    assert pred_y.shape == y.shape, "pred_y and y must have the same shape"
    n = int(pred_y.size)
    q = float(quantile)
    if n == 0:
        # torch.mean over an empty tensor yields NaN.
        return jnp.float32(float("nan"))

    pred_flat = jnp.ravel(pred_y)
    y_flat = jnp.ravel(y)

    def _loss_sum(p, t):
        b = p.astype(jnp.float32) - t.astype(jnp.float32)
        return jnp.sum(jnp.maximum(b * (q - 1.0), b * q))

    # Lane-dense slab width: prefer the widest multiple of 128 that divides n
    # exactly (no prefix slice / pad copy) and leaves >= 8 rows.
    cols = None
    for c in (512, 256, 128):
        if n % c == 0 and n // c >= 8:
            cols = c
            break
    if cols is None:
        for c in (512, 256, 128):
            if n % c == 0:
                cols = c
                break
    if cols is None:
        cols = 512

    rows = n // cols
    tail = n - rows * cols

    # Ragged tail (< cols elements): tiny jnp expression in the wrapper instead
    # of padding (and re-copying) the full inputs in HBM.
    tail_sum = jnp.float32(0.0)
    if tail:
        tail_sum = _loss_sum(pred_flat[rows * cols:], y_flat[rows * cols:])
    if rows == 0:
        return tail_sum / jnp.float32(n)

    pred2d = (pred_flat if tail == 0 else pred_flat[: rows * cols]).reshape(rows, cols)
    y2d = (y_flat if tail == 0 else y_flat[: rows * cols]).reshape(rows, cols)

    # Generation-aware block / VMEM sizing (bytes, not rows):
    #   v7x : 64 MiB physical VMEM/TC  -> ~4 MiB per input block, 32 MiB scoped.
    #   v6e : 128 MiB physical         -> ~8 MiB per input block, 64 MiB scoped.
    #   v5e / unknown                  -> ~4 MiB per input block, 32 MiB scoped
    #                                     (v5e scoped default is only 16 MiB).
    try:
        kind = jax.devices()[0].device_kind.lower()
    except Exception:  # e.g. interpret mode
        kind = ""
    is_v7 = "v7" in kind
    if "v6" in kind:
        block_bytes, vmem_limit = 8 << 20, 64 << 20
    else:
        block_bytes, vmem_limit = 4 << 20, 32 << 20

    itemsize = max(pred2d.dtype.itemsize, y2d.dtype.itemsize)
    max_tile_rows = max(8, (block_bytes // (cols * itemsize)) // 8 * 8)
    if rows < 8:
        tile_rows = rows                          # full-dim block (allowed)
    else:
        tile_rows = min(max_tile_rows, (rows // 8) * 8)
    row_blocks = -(-rows // tile_rows)

    # Chunk axis only on dual-TensorCore chips (v7x); pure overhead on 1-TC chips.
    num_chunks = 2 if (is_v7 and row_blocks >= 2) else 1
    inner_steps = -(-row_blocks // num_chunks)
    needs_mask = (rows % tile_rows != 0) or (inner_steps * num_chunks != row_blocks)

    kernel = functools.partial(
        _quantile_loss_kernel,
        quantile=q,
        valid_rows=rows,
        tile_rows=tile_rows,
        inner_steps=inner_steps,
        needs_mask=needs_mask,
    )

    def in_map(c, i):
        b = c * inner_steps + i
        if inner_steps * num_chunks > row_blocks:  # static: clamp duplicate block
            b = jnp.minimum(b, row_blocks - 1)     # (its rows are masked to 0)
        return (b, 0)

    bytes_in = rows * cols * (pred2d.dtype.itemsize + y2d.dtype.itemsize)

    out = pl.pallas_call(
        kernel,
        out_shape=jax.ShapeDtypeStruct((1, num_chunks * cols), jnp.float32),
        grid_spec=pltpu.PrefetchScalarGridSpec(
            num_scalar_prefetch=0,
            grid=(num_chunks, inner_steps),
            in_specs=[
                pl.BlockSpec((tile_rows, cols), in_map),
                pl.BlockSpec((tile_rows, cols), in_map),
            ],
            out_specs=pl.BlockSpec((1, cols), lambda c, i: (0, c)),
        ),
        compiler_params=pltpu.CompilerParams(
            dimension_semantics=("parallel", "arbitrary"),
            vmem_limit_bytes=vmem_limit,
        ),
        cost_estimate=pl.CostEstimate(
            flops=5 * rows * cols,
            transcendentals=0,
            bytes_accessed=bytes_in + num_chunks * cols * 4,
        ),
    )(pred2d, y2d)

    # NOTE: per-lane f32 accumulation order differs slightly from torch.mean's
    # sequential reduction; fine at realistic sizes.
    return (jnp.sum(out) + tail_sum) / jnp.float32(n)


if __name__ == "__main__":
    key = jax.random.PRNGKey(0)
    ks = jax.random.split(key, 8)
    q = 0.5

    def ref_loss(p, t, qq=q):
        b = p.astype(jnp.float32) - t.astype(jnp.float32)
        return jnp.mean(jnp.maximum(b * (qq - 1.0), b * qq))

    # Small check (2048 elems): single-block path (cols=256, 8 rows, no mask).
    shape = (2, 4, 16, 16)
    p1 = jax.random.normal(ks[0], shape, dtype=jnp.float32)
    t1 = jax.random.normal(ks[1], shape, dtype=jnp.float32)
    l1 = jax.block_until_ready(quantile_loss(p1, t1, q))
    assert jnp.allclose(l1, ref_loss(p1, t1), rtol=1e-5, atol=1e-6), (l1, ref_loss(p1, t1))

    # Multi-step reduction + in-kernel ragged-row mask (rows=20, tile_rows=16).
    shape2 = (20, 512)
    p2 = jax.random.normal(ks[2], shape2, dtype=jnp.float32)
    t2 = jax.random.normal(ks[3], shape2, dtype=jnp.float32)
    l2 = jax.block_until_ready(quantile_loss(p2, t2, q))
    assert jnp.allclose(l2, ref_loss(p2, t2), rtol=1e-5, atol=1e-6), (l2, ref_loss(p2, t2))

    # Ragged element count (2100 = 4*512 + 52): exercises the jnp tail path.
    shape3 = (7, 300)
    p3 = jax.random.normal(ks[4], shape3, dtype=jnp.float32)
    t3 = jax.random.normal(ks[5], shape3, dtype=jnp.float32)
    l3 = jax.block_until_ready(quantile_loss(p3, t3, q))
    assert jnp.allclose(l3, ref_loss(p3, t3), rtol=1e-5, atol=1e-6), (l3, ref_loss(p3, t3))

    # Larger check: asymmetric quantile + bf16 inputs (dtype-aware tiling).
    shape4 = (600, 1024)
    p4 = jax.random.normal(ks[6], shape4, dtype=jnp.bfloat16)
    t4 = jax.random.normal(ks[7], shape4, dtype=jnp.bfloat16)
    l4 = jax.block_until_ready(quantile_loss(p4, t4, 0.9))
    r4 = ref_loss(p4, t4, 0.9)
    assert jnp.allclose(l4, r4, rtol=1e-4, atol=1e-5), (l4, r4)

    print("KERNEL_OK")
</pallas_src>

<mosaic_0001>
module attributes {stable_mosaic.version = 11 : i64} {
  func.func @_quantile_loss_kernel(%arg0: i32, %arg1: i32, %arg2: memref<8x256xf32, #tpu.memory_space<vmem>>, %arg3: memref<8x256xf32, #tpu.memory_space<vmem>>, %arg4: memref<1x256xf32, #tpu.memory_space<vmem>>) attributes {dimension_semantics = [#tpu.dimension_semantics<parallel>, #tpu.dimension_semantics<arbitrary>], iteration_bounds = array<i64: 1, 1>, scalar_prefetch = 0 : i64, scratch_operands = 0 : i64, tpu.core_type = #tpu.core_type<tc>, window_params = [{transform_indices = @transform_0, window_bounds = array<i64: 8, 256>}, {transform_indices = @transform_1, window_bounds = array<i64: 8, 256>}, {transform_indices = @transform_2, window_bounds = array<i64: 1, 256>}]} {
    %c0_i32 = arith.constant 0 : i32
    %0 = arith.cmpi eq, %arg1, %c0_i32 : i32
    %1 = arith.extui %0 : i1 to i32
    %c0_i32_0 = arith.constant 0 : i32
    %2 = arith.cmpi ne, %1, %c0_i32_0 : i32
    scf.if %2 {
      %cst_10 = arith.constant 0.000000e+00 : f32
      %16 = vector.broadcast %cst_10 : f32 to vector<1x256xf32>
      %c0_11 = arith.constant 0 : index
      %c0_12 = arith.constant 0 : index
      %17 = vector.load %arg4[%c0_11, %c0_12] : memref<1x256xf32, #tpu.memory_space<vmem>>, vector<1x256xf32>
      tpu.vector_store %arg4[%c0_11, %c0_12], %16 {strides = array<i32>} : memref<1x256xf32, #tpu.memory_space<vmem>>, vector<1x256xf32>,
    } else {
    }
    %c0 = arith.constant 0 : index
    %c0_1 = arith.constant 0 : index
    %3 = vector.load %arg2[%c0, %c0_1] : memref<8x256xf32, #tpu.memory_space<vmem>>, vector<8x256xf32>
    %c0_2 = arith.constant 0 : index
    %c0_3 = arith.constant 0 : index
    %4 = vector.load %arg3[%c0_2, %c0_3] : memref<8x256xf32, #tpu.memory_space<vmem>>, vector<8x256xf32>
    %5 = arith.subf %3, %4 : vector<8x256xf32>
    %cst = arith.constant -5.000000e-01 : f32
    %6 = vector.broadcast %cst : f32 to vector<8x256xf32>
    %7 = arith.mulf %5, %6 : vector<8x256xf32>
    %cst_4 = arith.constant 5.000000e-01 : f32
    %8 = vector.broadcast %cst_4 : f32 to vector<8x256xf32>
    %9 = arith.mulf %5, %8 : vector<8x256xf32>
    %10 = arith.maximumf %7, %9 : vector<8x256xf32>
    %c0_5 = arith.constant 0 : index
    %c0_6 = arith.constant 0 : index
    %11 = vector.load %arg4[%c0_5, %c0_6] : memref<1x256xf32, #tpu.memory_space<vmem>>, vector<1x256xf32>
    %cst_7 = arith.constant dense<0.000000e+00> : vector<256xf32>
    %12 = vector.multi_reduction <add>, %10, %cst_7 [0] : vector<8x256xf32> to vector<256xf32>
    %13 = vector.shape_cast %12 : vector<256xf32> to vector<1x256xf32>
    %14 = arith.addf %11, %13 : vector<1x256xf32>
    %c0_8 = arith.constant 0 : index
    %c0_9 = arith.constant 0 : index
    %15 = vector.load %arg4[%c0_8, %c0_9] : memref<1x256xf32, #tpu.memory_space<vmem>>, vector<1x256xf32>
    tpu.vector_store %arg4[%c0_8, %c0_9], %14 {strides = array<i32>} : memref<1x256xf32, #tpu.memory_space<vmem>>, vector<1x256xf32>,
    return
  }
  func.func @transform_0(%arg0: i32, %arg1: i32) -> (i32, i32) {
    %c1_i32 = arith.constant 1 : i32
    %0 = arith.muli %arg0, %c1_i32 : i32
    %1 = arith.addi %0, %arg1 : i32
    %c0_i32 = arith.constant 0 : i32
    %c0_i32_0 = arith.constant 0 : i32
    return %1, %c0_i32 : i32, i32
  }
  func.func @transform_1(%arg0: i32, %arg1: i32) -> (i32, i32) {
    %c1_i32 = arith.constant 1 : i32
    %0 = arith.muli %arg0, %c1_i32 : i32
    %1 = arith.addi %0, %arg1 : i32
    %c0_i32 = arith.constant 0 : i32
    %c0_i32_0 = arith.constant 0 : i32
    return %1, %c0_i32 : i32, i32
  }
  func.func @transform_2(%arg0: i32, %arg1: i32) -> (i32, i32) {
    %c0_i32 = arith.constant 0 : i32
    %c0_i32_0 = arith.constant 0 : i32
    return %c0_i32, %arg0 : i32, i32
  }
}

</mosaic_0001>

<bundles_post_ra>
// kernel: tpu_custom_call.1
= control target key start
LH: loop header
LB: loop body
LE: loop exit
PB: predicated region body
PF: predicated region fallthrough
CT: control target
= control target key end

     0   :  { %7 = vsyncpa [#allocation3], 0  ;;  %s228_s0 = inlined_call_operand.hbm [shape: f32[8,256], index: 0, kind: input, shape index: {}]   ;;  %s229_s1 = inlined_call_operand.hbm [shape: f32[8,256], index: 1, kind: input, shape index: {}]   ;;  %s230_s2 = inlined_call_operand.hbm [shape: f32[1,256], index: 2, kind: output, shape index: {}]  }
   0x1   :  { %8 = vsyncpa [#allocation6], 0 }
   0x2   :  { %9 = vsyncpa [#allocation4], 0  ;;  %s191_s9 = smov [#allocation2]   ;;  %s192_s11 = smov [#allocation5]  }
   0x3   :  { %s20_s10 = sshll.u32 %s191_s9, 4  ;;  %s34_s12 = sshll.u32 %s192_s11, 4  ;;  %s21_s10 = int_to_ptr.vmem [resolvable:$true] %s20_s10  ;;  %s35_s12 = int_to_ptr.vmem [resolvable:$true] %s34_s12 }
   0x4   :  { %s133_s13 = scalar_lea.vmem %s21_s10, 256  ;;  %p138_p1 = scmp.lt.s32.totalorder %s21_s10, %s21_s10 }
   0x5   :  { %p134_p0 = scmp.ne.s32.totalorder %s21_s10, %s133_s13  ;;  %p139_p2 = scmp.lt.s32.totalorder %s133_s13, %s133_s13 }
   0x7   :  { %p140_p3 = por %p139_p2, %p138_p1 }
   0x9   :  { %p141_p4 = pnand %p140_p3, %p134_p0 }
   0xb   :  { %144 = shalt.err (!%p141_p4)
}
   0xc   :  { %23 = dma.hbm_to_vmem [thread:$0]  %s228_s0, 256, %s21_s10, [#allocation3]  }
   0xd   :  { %s153_s16 = scalar_lea.vmem %s35_s12, 256  ;;  %p158_p6 = scmp.lt.s32.totalorder %s35_s12, %s35_s12 }
   0xe   :  { %p154_p5 = scmp.ne.s32.totalorder %s35_s12, %s153_s16  ;;  %p159_p7 = scmp.lt.s32.totalorder %s153_s16, %s153_s16 }
  0x10   :  { %p160_p8 = por %p159_p7, %p158_p6 }
  0x12   :  { %p161_p9 = pnand %p160_p8, %p154_p5 }
  0x14   :  { %164 = shalt.err (!%p161_p9)
}
  0x15   :  { %37 = dma.hbm_to_vmem [thread:$0]  %s229_s1, 256, %s35_s12, [#allocation6]  }
  0x16   :  { %185 = dma.done.wait [#allocation3], 256  }
  0x17   :  { %186 = vsyncadd [#allocation3], 4294967040 }
  0x18   :  { %187 = dma.done.wait [#allocation6], 256  }
  0x19   :  { %188 = vsyncadd [#allocation6], 4294967040  ;;  %v50_v0 = vlaneseq  ;;  %v193_v2 = vmov 0.0   ;;  %v55_v3 = vld [vmem:[#allocation2] sm:$0xff]  ;;  %v56_v4 = vld [vmem:[#allocation2 + $0x8] sm:$0xff]  ;;  %s195_s0 = smov [#allocation7]  }
  0x1a   :  { %v57_v5 = vld [vmem:[#allocation5] sm:$0xff]  ;;  %v58_v6 = vld [vmem:[#allocation5 + $0x8] sm:$0xff]  ;;  %v194_v19 = vmov 1966171168   ;;  %s110_s1 = sshll.u32 %s195_s0, 4  ;;  %s111_s1 = int_to_ptr.vmem [resolvable:$true] %s110_s1 }
  0x1b   :  { %vm217_vm0 = vcmp.lt.s32.totalorder %v50_v0, 256  ;;  %v59_v7 = vsub.f32 %v55_v3, %v57_v5  ;;  %v60_v8 = vsub.f32 %v56_v4, %v58_v6  ;;  %v84_v20 = vunpack.c.l.s4 %v194_v19  ;;  %s165_s19 = scalar_lea.vmem %s111_s1, 32  ;;  %p170_p11 = scmp.lt.s32.totalorder %s111_s1, %s111_s1 }
  0x1c   :  { %54 = vst.msk [vmem:[#allocation7] sm:$0x3] %vm217_vm0, %v193_v2  ;;  %v87_v26 = vshrl.u32 %v50_v0, 7  ;;  %p166_p10 = scmp.ne.s32.totalorder %s111_s1, %s165_s19  ;;  %p171_p12 = scmp.lt.s32.totalorder %s165_s19, %s165_s19 }
  0x1d   :  { %v61_v9 = vmul.f32 -0.5, %v59_v7  ;;  %v63_v10 = vmul.f32 0.5, %v59_v7  ;;  %v62_v11 = vmul.f32 -0.5, %v60_v8  ;;  %v64_v12 = vmul.f32 0.5, %v60_v8 }
  0x1e   :  { %v85_v25 = vunpack.c.0.s8 %v84_v20  ;;  %p172_p13 = por %p171_p12, %p170_p11 }
  0x1f   :  { %v65_v13 = vmax.f32 %v61_v9, %v63_v10  ;;  %v66_v14 = vmax.f32 %v62_v11, %v64_v12 }
  0x20   :  { %v88_v31 = vsub.s32 %v85_v25, %v87_v26  ;;  %p173_p0 = pnand %p172_p13, %p166_p10 }
  0x21   :  { %v68_v15 = vrot.slane %v65_v13, 4  ;;  %v74_v16 = vrot.slane %v66_v14, 4 }
  0x23   :  { %v69_v17 = vadd.f32 %v68_v15, %v65_v13  ;;  %v75_v18 = vadd.f32 %v74_v16, %v66_v14  ;;  %v67_v34 = vld [vmem:[#allocation7] sm:$0x3] }
  0x25   :  { %v70_v21 = vrot.slane %v69_v17, 2  ;;  %v76_v22 = vrot.slane %v75_v18, 2 }
  0x27   :  { %v71_v23 = vadd.f32 %v70_v21, %v69_v17  ;;  %v77_v24 = vadd.f32 %v76_v22, %v75_v18 }
  0x29   :  { %v72_v27 = vrot.slane %v71_v23, 1  ;;  %v78_v28 = vrot.slane %v77_v24, 1 }
  0x2b   :  { %v73_v29 = vadd.f32 %v72_v27, %v71_v23  ;;  %v79_v30 = vadd.f32 %v78_v28, %v77_v24 }
  0x2d   :  { %v82_v32 = vcombine.low %v73_v29, %v79_v30 }
  0x2f   :  { %v89_v33 = vrot.slane %v82_v32, %v88_v31 }
  0x31   :  { %v96_v35 = vrot.slane %v89_v33, %v88_v31 }
  0x33   :  { %v98_v36 = vadd.f32 %v96_v35, %v67_v34 }
  0x35   :  { %103 = vst.msk [vmem:[#allocation7] sm:$0x3] %vm217_vm0, %v98_v36 }
  0x36   :  { %176 = shalt.err (!%p173_p0)
}
  0x37   :  { %113 = dma.vmem_to_hbm [thread:$0]  %s111_s1, 32, %s230_s2, [#allocation4]  }
  0x38   :  { %189 = dma.done.wait [#allocation4], 32  }
  0x39   :  { %190 = vsyncadd [#allocation4], 4294967264 }
  0x3a   :  { %117 = vsyncpa [#allocation3], 1 }
  0x3b   :  { %118 = vsyncpa [#allocation6], 1 }
  0x3c   :  { %119 = vsyncpa [#allocation4], 1 }

</bundles_post_ra>
